<compile_context>
chip_gen: v6e
topology: v6e:2x2x1
jax: 0.10.0
libtpu: 0.0.40
codegen_flags: <defaults>
</compile_context>

<pallas_src>
import math

import jax
import jax.numpy as jnp
import numpy as np
from jax.experimental import pallas as pl
from jax.experimental.pallas import tpu as pltpu


def _round_up(x: int, m: int) -> int:
    return ((x + m - 1) // m) * m


def _make_gather_kernel(tile_m: int, acc_dtype):
    """Kernel over one (tile_r, tile_p) output block and one M-chunk.

    x_ref:   (T, tile_m)   values for this M-chunk
    idx_ref: (T, tile_p)   int32 indices into the *global* gather dim
    o_ref:   (T, tile_p)   output block (resident across the M grid axis)
    acc_ref: (T, tile_p)   accumulator scratch (acc_dtype)
    """

    def kernel(x_ref, idx_ref, o_ref, acc_ref):
        mk = pl.program_id(2)

        @pl.when(mk == 0)
        def _init():
            acc_ref[...] = jnp.zeros_like(acc_ref)

        idx = idx_ref[...].astype(jnp.int32)          # (T, P)
        base = mk * tile_m                            # scalar, start of chunk
        acc = acc_ref[...]

        # Statically unrolled compare-and-select over the chunk columns.
        # Each step: 1 narrow vld + 1 vcmp + 1 vsel per vreg row-group; the
        # accumulator stays entirely in vregs / VMEM scratch.
        for m in range(tile_m):
            col = x_ref[:, m:m + 1].astype(acc_dtype)          # (T, 1)
            acc = jnp.where(idx == base + m, col, acc)
        acc_ref[...] = acc

        @pl.when(mk == pl.num_programs(2) - 1)
        def _finalize():
            o_ref[...] = acc_ref[...].astype(o_ref.dtype)

    return kernel


def _gather_pallas_2d(x2d: jax.Array, idx2d: jax.Array) -> jax.Array:
    """out[r, p] = x2d[r, idx2d[r, p]]  for 2D operands."""
    R, M = x2d.shape
    _, P = idx2d.shape
    x_dtype = x2d.dtype
    itemsize = jnp.dtype(x_dtype).itemsize

    # Exact accumulator dtype.
    if itemsize >= 4:
        acc_dtype = x_dtype
    elif jnp.issubdtype(x_dtype, jnp.floating):
        acc_dtype = jnp.float32
    else:
        acc_dtype = jnp.int32

    # ---- tile selection -------------------------------------------------
    # Lane-dense output: pad P to a multiple of 128 (padding lanes were
    # wasted vreg lanes anyway, so this costs ~no extra vector work).
    P_pad = _round_up(max(P, 1), 128)
    tile_p = 256 if P_pad % 256 == 0 else 128

    # Gather-dim chunking: full dim if small, otherwise 128-wide chunks on a
    # grid reduction axis.
    if M <= 128:
        tile_m, M_pad = M, M
    else:
        tile_m = 128
        M_pad = _round_up(M, tile_m)

    budget = 8 * 1024 * 1024  # conservative for v7x (64 MiB VMEM) and below
    r_pad8 = _round_up(max(R, 1), 8)

    def vmem_bytes(tr: int) -> int:
        return (2 * tr * tile_m * itemsize       # x block, double buffered
                + 2 * tr * tile_p * 4            # idx block
                + 2 * tr * tile_p * itemsize     # out block
                + tr * tile_p * 4)               # accumulator scratch

    tile_r = 128
    while tile_r > 8 and vmem_bytes(tile_r) > budget:
        tile_r //= 2
    # Keep >= 2 row blocks when possible (pipelining / megacore sharding).
    while tile_r > 8 and r_pad8 < 2 * tile_r:
        tile_r //= 2
    R_pad = _round_up(r_pad8, tile_r)

    # ---- pad operands ----------------------------------------------------
    xp = jnp.pad(x2d, ((0, R_pad - R), (0, M_pad - M)))
    ip = jnp.pad(idx2d, ((0, R_pad - R), (0, P_pad - P)))

    grid = (R_pad // tile_r, P_pad // tile_p, M_pad // tile_m)

    out = pl.pallas_call(
        _make_gather_kernel(tile_m, acc_dtype),
        out_shape=jax.ShapeDtypeStruct((R_pad, P_pad), x_dtype),
        grid_spec=pltpu.PrefetchScalarGridSpec(
            num_scalar_prefetch=0,
            grid=grid,
            in_specs=[
                pl.BlockSpec((tile_r, tile_m), lambda i, j, k: (i, k)),
                pl.BlockSpec((tile_r, tile_p), lambda i, j, k: (i, j)),
            ],
            out_specs=pl.BlockSpec((tile_r, tile_p), lambda i, j, k: (i, j)),
            scratch_shapes=[pltpu.VMEM((tile_r, tile_p), acc_dtype)],
        ),
        compiler_params=pltpu.CompilerParams(
            dimension_semantics=("parallel", "parallel", "arbitrary"),
            vmem_limit_bytes=32 * 1024 * 1024,
        ),
    )(xp, ip)

    return out[:R, :P]


class GatherPallas:
    """Pallas equivalent of onnx2pytorch Gather (torch.gather semantics)."""

    def __init__(self, dim: int = 0):
        self.dim = dim

    def __call__(self, inp: jax.Array, index: jax.Array) -> jax.Array:
        assert inp.ndim == index.ndim, "index must have same rank as input"
        dim = self.dim % inp.ndim

        out_dtype = inp.dtype
        if inp.dtype == jnp.bool_:
            inp = inp.astype(jnp.int32)

        # torch.gather allows index.size(d) <= input.size(d) for d != dim:
        # restrict input to the index extent on non-gather dims.
        slices = tuple(
            slice(None) if d == dim else slice(0, index.shape[d])
            for d in range(inp.ndim)
        )
        inp = inp[slices]

        # Move gather dim to last axis; flatten everything else into rows.
        xm = jnp.moveaxis(inp, dim, -1)
        im = jnp.moveaxis(index, dim, -1)
        batch_shape = im.shape[:-1]
        r = int(np.prod(batch_shape)) if batch_shape else 1
        m = xm.shape[-1]
        p = im.shape[-1]

        x2 = xm.reshape(r, m)
        i2 = im.reshape(r, p).astype(jnp.int32)

        out2 = _gather_pallas_2d(x2, i2)

        out = out2.reshape(*batch_shape, p)
        out = jnp.moveaxis(out, -1, dim)
        return out.astype(out_dtype)


if __name__ == "__main__":
    key = jax.random.PRNGKey(0)
    kx, ki1, ki2 = jax.random.split(key, 3)

    # Example 1: gather along dim=3 (last spatial dim), NCHW-style data.
    x = jax.random.normal(kx, (2, 4, 16, 16), dtype=jnp.float32)
    idx3 = jax.random.randint(ki1, (2, 4, 16, 8), 0, 16, dtype=jnp.int32)
    out3 = GatherPallas(dim=3)(x, idx3)
    out3 = jax.block_until_ready(out3)
    ref3 = jnp.take_along_axis(x, idx3, axis=3)
    assert out3.shape == idx3.shape
    assert jnp.allclose(out3, ref3), "dim=3 gather mismatch"

    # Example 2: gather along dim=1 (channels), index narrower on dim 1.
    idx1 = jax.random.randint(ki2, (2, 3, 16, 16), 0, 4, dtype=jnp.int32)
    out1 = GatherPallas(dim=1)(x, idx1)
    out1 = jax.block_until_ready(out1)
    ref1 = jnp.take_along_axis(x, idx1, axis=1)
    assert out1.shape == idx1.shape
    assert jnp.allclose(out1, ref1), "dim=1 gather mismatch"

    print("KERNEL_OK")
</pallas_src>

<mosaic_0001>
module attributes {stable_mosaic.version = 11 : i64} {
  func.func @kernel(%arg0: i32, %arg1: i32, %arg2: i32, %arg3: memref<64x16xf32, #tpu.memory_space<vmem>>, %arg4: memref<64x128xi32, #tpu.memory_space<vmem>>, %arg5: memref<64x128xf32, #tpu.memory_space<vmem>>, %arg6: memref<64x128xf32, #tpu.memory_space<vmem>>) attributes {dimension_semantics = [#tpu.dimension_semantics<parallel>, #tpu.dimension_semantics<parallel>, #tpu.dimension_semantics<arbitrary>], iteration_bounds = array<i64: 2, 1, 1>, scalar_prefetch = 0 : i64, scratch_operands = 1 : i64, tpu.core_type = #tpu.core_type<tc>, window_params = [{transform_indices = @transform_0, window_bounds = array<i64: 64, 16>}, {transform_indices = @transform_1, window_bounds = array<i64: 64, 128>}, {transform_indices = @transform_2, window_bounds = array<i64: 64, 128>}]} {
    %c0_i32 = arith.constant 0 : i32
    %0 = arith.cmpi eq, %arg2, %c0_i32 : i32
    %1 = arith.extui %0 : i1 to i32
    %c0_i32_0 = arith.constant 0 : i32
    %2 = arith.cmpi ne, %1, %c0_i32_0 : i32
    scf.if %2 {
      %cst = arith.constant 0.000000e+00 : f32
      %122 = vector.broadcast %cst : f32 to vector<64x128xf32>
      %c0_26 = arith.constant 0 : index
      %c0_27 = arith.constant 0 : index
      %123 = vector.load %arg6[%c0_26, %c0_27] : memref<64x128xf32, #tpu.memory_space<vmem>>, vector<64x128xf32>
      tpu.vector_store %arg6[%c0_26, %c0_27], %122 {strides = array<i32>} : memref<64x128xf32, #tpu.memory_space<vmem>>, vector<64x128xf32>,
    } else {
    }
    %c0 = arith.constant 0 : index
    %c0_1 = arith.constant 0 : index
    %3 = vector.load %arg4[%c0, %c0_1] : memref<64x128xi32, #tpu.memory_space<vmem>>, vector<64x128xi32>
    %c16_i32 = arith.constant 16 : i32
    %4 = arith.muli %arg2, %c16_i32 : i32
    %c0_2 = arith.constant 0 : index
    %c0_3 = arith.constant 0 : index
    %5 = vector.load %arg6[%c0_2, %c0_3] : memref<64x128xf32, #tpu.memory_space<vmem>>, vector<64x128xf32>
    %c0_4 = arith.constant 0 : index
    %c0_5 = arith.constant 0 : index
    %6 = vector.load %arg3[%c0_4, %c0_5] : memref<64x16xf32, #tpu.memory_space<vmem>>, vector<64x1xf32>
    %c0_i32_6 = arith.constant 0 : i32
    %7 = arith.addi %4, %c0_i32_6 : i32
    %8 = vector.broadcast %7 : i32 to vector<64x128xi32>
    %9 = arith.cmpi eq, %3, %8 : vector<64x128xi32>
    %10 = vector.shape_cast %6 : vector<64x1xf32> to vector<64x1xf32>
    %11 = vector.broadcast %10 : vector<64x1xf32> to vector<64x128xf32>
    %12 = arith.select %9, %11, %5 : vector<64x128xi1>, vector<64x128xf32>
    %c0_7 = arith.constant 0 : index
    %c1 = arith.constant 1 : index
    %13 = vector.load %arg3[%c0_7, %c1] : memref<64x16xf32, #tpu.memory_space<vmem>>, vector<64x1xf32>
    %c1_i32 = arith.constant 1 : i32
    %14 = arith.addi %4, %c1_i32 : i32
    %15 = vector.broadcast %14 : i32 to vector<64x128xi32>
    %16 = arith.cmpi eq, %3, %15 : vector<64x128xi32>
    %17 = vector.shape_cast %13 : vector<64x1xf32> to vector<64x1xf32>
    %18 = vector.broadcast %17 : vector<64x1xf32> to vector<64x128xf32>
    %19 = arith.select %16, %18, %12 : vector<64x128xi1>, vector<64x128xf32>
    %c0_8 = arith.constant 0 : index
    %c2 = arith.constant 2 : index
    %20 = vector.load %arg3[%c0_8, %c2] : memref<64x16xf32, #tpu.memory_space<vmem>>, vector<64x1xf32>
    %c2_i32 = arith.constant 2 : i32
    %21 = arith.addi %4, %c2_i32 : i32
    %22 = vector.broadcast %21 : i32 to vector<64x128xi32>
    %23 = arith.cmpi eq, %3, %22 : vector<64x128xi32>
    %24 = vector.shape_cast %20 : vector<64x1xf32> to vector<64x1xf32>
    %25 = vector.broadcast %24 : vector<64x1xf32> to vector<64x128xf32>
    %26 = arith.select %23, %25, %19 : vector<64x128xi1>, vector<64x128xf32>
    %c0_9 = arith.constant 0 : index
    %c3 = arith.constant 3 : index
    %27 = vector.load %arg3[%c0_9, %c3] : memref<64x16xf32, #tpu.memory_space<vmem>>, vector<64x1xf32>
    %c3_i32 = arith.constant 3 : i32
    %28 = arith.addi %4, %c3_i32 : i32
    %29 = vector.broadcast %28 : i32 to vector<64x128xi32>
    %30 = arith.cmpi eq, %3, %29 : vector<64x128xi32>
    %31 = vector.shape_cast %27 : vector<64x1xf32> to vector<64x1xf32>
    %32 = vector.broadcast %31 : vector<64x1xf32> to vector<64x128xf32>
    %33 = arith.select %30, %32, %26 : vector<64x128xi1>, vector<64x128xf32>
    %c0_10 = arith.constant 0 : index
    %c4 = arith.constant 4 : index
    %34 = vector.load %arg3[%c0_10, %c4] : memref<64x16xf32, #tpu.memory_space<vmem>>, vector<64x1xf32>
    %c4_i32 = arith.constant 4 : i32
    %35 = arith.addi %4, %c4_i32 : i32
    %36 = vector.broadcast %35 : i32 to vector<64x128xi32>
    %37 = arith.cmpi eq, %3, %36 : vector<64x128xi32>
    %38 = vector.shape_cast %34 : vector<64x1xf32> to vector<64x1xf32>
    %39 = vector.broadcast %38 : vector<64x1xf32> to vector<64x128xf32>
    %40 = arith.select %37, %39, %33 : vector<64x128xi1>, vector<64x128xf32>
    %c0_11 = arith.constant 0 : index
    %c5 = arith.constant 5 : index
    %41 = vector.load %arg3[%c0_11, %c5] : memref<64x16xf32, #tpu.memory_space<vmem>>, vector<64x1xf32>
    %c5_i32 = arith.constant 5 : i32
    %42 = arith.addi %4, %c5_i32 : i32
    %43 = vector.broadcast %42 : i32 to vector<64x128xi32>
    %44 = arith.cmpi eq, %3, %43 : vector<64x128xi32>
    %45 = vector.shape_cast %41 : vector<64x1xf32> to vector<64x1xf32>
    %46 = vector.broadcast %45 : vector<64x1xf32> to vector<64x128xf32>
    %47 = arith.select %44, %46, %40 : vector<64x128xi1>, vector<64x128xf32>
    %c0_12 = arith.constant 0 : index
    %c6 = arith.constant 6 : index
    %48 = vector.load %arg3[%c0_12, %c6] : memref<64x16xf32, #tpu.memory_space<vmem>>, vector<64x1xf32>
    %c6_i32 = arith.constant 6 : i32
    %49 = arith.addi %4, %c6_i32 : i32
    %50 = vector.broadcast %49 : i32 to vector<64x128xi32>
    %51 = arith.cmpi eq, %3, %50 : vector<64x128xi32>
    %52 = vector.shape_cast %48 : vector<64x1xf32> to vector<64x1xf32>
    %53 = vector.broadcast %52 : vector<64x1xf32> to vector<64x128xf32>
    %54 = arith.select %51, %53, %47 : vector<64x128xi1>, vector<64x128xf32>
    %c0_13 = arith.constant 0 : index
    %c7 = arith.constant 7 : index
    %55 = vector.load %arg3[%c0_13, %c7] : memref<64x16xf32, #tpu.memory_space<vmem>>, vector<64x1xf32>
    %c7_i32 = arith.constant 7 : i32
    %56 = arith.addi %4, %c7_i32 : i32
    %57 = vector.broadcast %56 : i32 to vector<64x128xi32>
    %58 = arith.cmpi eq, %3, %57 : vector<64x128xi32>
    %59 = vector.shape_cast %55 : vector<64x1xf32> to vector<64x1xf32>
    %60 = vector.broadcast %59 : vector<64x1xf32> to vector<64x128xf32>
    %61 = arith.select %58, %60, %54 : vector<64x128xi1>, vector<64x128xf32>
    %c0_14 = arith.constant 0 : index
    %c8 = arith.constant 8 : index
    %62 = vector.load %arg3[%c0_14, %c8] : memref<64x16xf32, #tpu.memory_space<vmem>>, vector<64x1xf32>
    %c8_i32 = arith.constant 8 : i32
    %63 = arith.addi %4, %c8_i32 : i32
    %64 = vector.broadcast %63 : i32 to vector<64x128xi32>
    %65 = arith.cmpi eq, %3, %64 : vector<64x128xi32>
    %66 = vector.shape_cast %62 : vector<64x1xf32> to vector<64x1xf32>
    %67 = vector.broadcast %66 : vector<64x1xf32> to vector<64x128xf32>
    %68 = arith.select %65, %67, %61 : vector<64x128xi1>, vector<64x128xf32>
    %c0_15 = arith.constant 0 : index
    %c9 = arith.constant 9 : index
    %69 = vector.load %arg3[%c0_15, %c9] : memref<64x16xf32, #tpu.memory_space<vmem>>, vector<64x1xf32>
    %c9_i32 = arith.constant 9 : i32
    %70 = arith.addi %4, %c9_i32 : i32
    %71 = vector.broadcast %70 : i32 to vector<64x128xi32>
    %72 = arith.cmpi eq, %3, %71 : vector<64x128xi32>
    %73 = vector.shape_cast %69 : vector<64x1xf32> to vector<64x1xf32>
    %74 = vector.broadcast %73 : vector<64x1xf32> to vector<64x128xf32>
    %75 = arith.select %72, %74, %68 : vector<64x128xi1>, vector<64x128xf32>
    %c0_16 = arith.constant 0 : index
    %c10 = arith.constant 10 : index
    %76 = vector.load %arg3[%c0_16, %c10] : memref<64x16xf32, #tpu.memory_space<vmem>>, vector<64x1xf32>
    %c10_i32 = arith.constant 10 : i32
    %77 = arith.addi %4, %c10_i32 : i32
    %78 = vector.broadcast %77 : i32 to vector<64x128xi32>
    %79 = arith.cmpi eq, %3, %78 : vector<64x128xi32>
    %80 = vector.shape_cast %76 : vector<64x1xf32> to vector<64x1xf32>
    %81 = vector.broadcast %80 : vector<64x1xf32> to vector<64x128xf32>
    %82 = arith.select %79, %81, %75 : vector<64x128xi1>, vector<64x128xf32>
    %c0_17 = arith.constant 0 : index
    %c11 = arith.constant 11 : index
    %83 = vector.load %arg3[%c0_17, %c11] : memref<64x16xf32, #tpu.memory_space<vmem>>, vector<64x1xf32>
    %c11_i32 = arith.constant 11 : i32
    %84 = arith.addi %4, %c11_i32 : i32
    %85 = vector.broadcast %84 : i32 to vector<64x128xi32>
    %86 = arith.cmpi eq, %3, %85 : vector<64x128xi32>
    %87 = vector.shape_cast %83 : vector<64x1xf32> to vector<64x1xf32>
    %88 = vector.broadcast %87 : vector<64x1xf32> to vector<64x128xf32>
    %89 = arith.select %86, %88, %82 : vector<64x128xi1>, vector<64x128xf32>
    %c0_18 = arith.constant 0 : index
    %c12 = arith.constant 12 : index
    %90 = vector.load %arg3[%c0_18, %c12] : memref<64x16xf32, #tpu.memory_space<vmem>>, vector<64x1xf32>
    %c12_i32 = arith.constant 12 : i32
    %91 = arith.addi %4, %c12_i32 : i32
    %92 = vector.broadcast %91 : i32 to vector<64x128xi32>
    %93 = arith.cmpi eq, %3, %92 : vector<64x128xi32>
    %94 = vector.shape_cast %90 : vector<64x1xf32> to vector<64x1xf32>
    %95 = vector.broadcast %94 : vector<64x1xf32> to vector<64x128xf32>
    %96 = arith.select %93, %95, %89 : vector<64x128xi1>, vector<64x128xf32>
    %c0_19 = arith.constant 0 : index
    %c13 = arith.constant 13 : index
    %97 = vector.load %arg3[%c0_19, %c13] : memref<64x16xf32, #tpu.memory_space<vmem>>, vector<64x1xf32>
    %c13_i32 = arith.constant 13 : i32
    %98 = arith.addi %4, %c13_i32 : i32
    %99 = vector.broadcast %98 : i32 to vector<64x128xi32>
    %100 = arith.cmpi eq, %3, %99 : vector<64x128xi32>
    %101 = vector.shape_cast %97 : vector<64x1xf32> to vector<64x1xf32>
    %102 = vector.broadcast %101 : vector<64x1xf32> to vector<64x128xf32>
    %103 = arith.select %100, %102, %96 : vector<64x128xi1>, vector<64x128xf32>
    %c0_20 = arith.constant 0 : index
    %c14 = arith.constant 14 : index
    %104 = vector.load %arg3[%c0_20, %c14] : memref<64x16xf32, #tpu.memory_space<vmem>>, vector<64x1xf32>
    %c14_i32 = arith.constant 14 : i32
    %105 = arith.addi %4, %c14_i32 : i32
    %106 = vector.broadcast %105 : i32 to vector<64x128xi32>
    %107 = arith.cmpi eq, %3, %106 : vector<64x128xi32>
    %108 = vector.shape_cast %104 : vector<64x1xf32> to vector<64x1xf32>
    %109 = vector.broadcast %108 : vector<64x1xf32> to vector<64x128xf32>
    %110 = arith.select %107, %109, %103 : vector<64x128xi1>, vector<64x128xf32>
    %c0_21 = arith.constant 0 : index
    %c15 = arith.constant 15 : index
    %111 = vector.load %arg3[%c0_21, %c15] : memref<64x16xf32, #tpu.memory_space<vmem>>, vector<64x1xf32>
    %c15_i32 = arith.constant 15 : i32
    %112 = arith.addi %4, %c15_i32 : i32
    %113 = vector.broadcast %112 : i32 to vector<64x128xi32>
    %114 = arith.cmpi eq, %3, %113 : vector<64x128xi32>
    %115 = vector.shape_cast %111 : vector<64x1xf32> to vector<64x1xf32>
    %116 = vector.broadcast %115 : vector<64x1xf32> to vector<64x128xf32>
    %117 = arith.select %114, %116, %110 : vector<64x128xi1>, vector<64x128xf32>
    %c0_22 = arith.constant 0 : index
    %c0_23 = arith.constant 0 : index
    %118 = vector.load %arg6[%c0_22, %c0_23] : memref<64x128xf32, #tpu.memory_space<vmem>>, vector<64x128xf32>
    tpu.vector_store %arg6[%c0_22, %c0_23], %117 {strides = array<i32>} : memref<64x128xf32, #tpu.memory_space<vmem>>, vector<64x128xf32>,
    %c0_i32_24 = arith.constant 0 : i32
    %119 = arith.cmpi eq, %arg2, %c0_i32_24 : i32
    %120 = arith.extui %119 : i1 to i32
    %c0_i32_25 = arith.constant 0 : i32
    %121 = arith.cmpi ne, %120, %c0_i32_25 : i32
    scf.if %121 {
      %c0_26 = arith.constant 0 : index
      %c0_27 = arith.constant 0 : index
      %122 = vector.load %arg6[%c0_26, %c0_27] : memref<64x128xf32, #tpu.memory_space<vmem>>, vector<64x128xf32>
      %c0_28 = arith.constant 0 : index
      %c0_29 = arith.constant 0 : index
      %123 = vector.load %arg5[%c0_28, %c0_29] : memref<64x128xf32, #tpu.memory_space<vmem>>, vector<64x128xf32>
      tpu.vector_store %arg5[%c0_28, %c0_29], %122 {strides = array<i32>} : memref<64x128xf32, #tpu.memory_space<vmem>>, vector<64x128xf32>,
    } else {
    }
    return
  }
  func.func @transform_0(%arg0: i32, %arg1: i32, %arg2: i32) -> (i32, i32) {
    %c0_i32 = arith.constant 0 : i32
    return %arg0, %arg2 : i32, i32
  }
  func.func @transform_1(%arg0: i32, %arg1: i32, %arg2: i32) -> (i32, i32) {
    %c0_i32 = arith.constant 0 : i32
    return %arg0, %arg1 : i32, i32
  }
  func.func @transform_2(%arg0: i32, %arg1: i32, %arg2: i32) -> (i32, i32) {
    %c0_i32 = arith.constant 0 : i32
    return %arg0, %arg1 : i32, i32
  }
}

</mosaic_0001>

<bundles_post_ra>
// kernel: tpu_custom_call.1
= control target key start
LH: loop header
LB: loop body
LE: loop exit
PB: predicated region body
PF: predicated region fallthrough
CT: control target
= control target key end

     0   :  { %7 = vsyncpa [#allocation4], 0  ;;  %s1947_s0 = inlined_call_operand.vmem [shape: f32[128,16], index: 0, kind: input, shape index: {}]   ;;  %s1948_s1 = inlined_call_operand.vmem [shape: s32[128,128], index: 1, kind: input, shape index: {}]   ;;  %s1949_s2 = inlined_call_operand.hbm [shape: f32[128,128], index: 2, kind: output, shape index: {}]  }
   0x1   :  { %9 = vsyncpa [#allocation4 + $0x1], 0  ;;  %s1422_s9 = smov 0   ;;  %s1424_s10 = smov 0  }
   0x2   :  { %s1426_s11 = smov 0   ;;  %s1428_s12 = smov 0  }
   0x3   :  { %s1430_s13 = smov 0   ;;  %s1432_s14 = smov 0  }
   0x4 LB: > { %s1189_s15 = sadd.s32 4294967295, %s1386_s14   ;;  %s1190_s16 = sadd.s32 4294967294, %s1386_s14   ;;  %s1386_s14 = sphi %s1432_s14, %s15_s14   ;;  %s1382_s13 = sphi %s1430_s13, %s1956_s13   ;;  %s1378_s12 = sphi %s1428_s12, %s1955_s12   ;;  %s1374_s11 = sphi %s1426_s11, %s1954_s11   ;;  %s1370_s10 = sphi %s1424_s10, %s1953_s10   ;;  %s1366_s9 = sphi %s1422_s9, %s1952_s9  }
   0x5   : > { %s34_s17 = sadd.s32 1, %s1382_s13  ;;  %s99_s18 = sadd.s32 1, %s1374_s11 }
   0x6   : > { %p36_p0 = scmp.ge.s32.totalorder %s34_s17, 2  ;;  %p109_p1 = scmp.ne.s32.totalorder %s1374_s11, %s1370_s10 }
   0x7   : > { %p110_p2 = scmp.eq.s32.totalorder %s1189_s15, 1  ;;  %p115_p3 = scmp.ne.s32.totalorder %s1370_s10, %s1366_s9 }
   0x8   : > { %s1958_s17 = smov (%p36_p0, %s34_s17), 0  ;;  %p116_p5 = scmp.eq.s32.totalorder %s1190_s16, 1 }
   0x9   : > { %p1462_p4 = por %p110_p2, %p109_p1  ;;  %s94_s20 = ssub.s32 %s1382_s13, %s1958_s17 }
   0xa   : > { %p1193_p6 = scmp.ge.s32.totalorder %s1386_s14, 1  ;;  %p97_p7 = scmp.eq.s32.totalorder %s94_s20, 0 }
   0xb   : > { %p1469_p8 = por %p116_p5, %p115_p3  ;;  %p158_p9 = scmp.lt.s32.totalorder %s1386_s14, 3 }
   0xc   : > { %s1475_s22 = scalar_select %p97_p7, %s1374_s11, %s99_s18  }
   0xd   : > { %p159_p10 = pnand %p1193_p6, %p158_p9 }
   0xe   : > { %s1195_s23 = sshll.u32 (!%p159_p10), %s1378_s12, 3  ;;  %s188_s3 = sand.u32 (!%p159_p10), 1, %s1370_s10  }
   0xf   : > { %162 = sbr.rel (%p159_p10) target bundleno = 458 (0x1ca), region = 28  ;;  %p192_p11 = scmp.lt.s32.totalorder (!%p159_p10), %s1195_s23, 15 }
  0x10   : > { %s1194_s4 = sshll.u32 (!%p159_p10), %s188_s3, 6  ;;  %s1204_s6 = sshll.u32 (!%p159_p10), %s1378_s12, 10 }
  0x11   : > { %s1871_s5 = scalar_lea.vmem (!%p159_p10), [#allocation3], %s1194_s4  ;;  %s1895_s16 = scalar_lea.hbm (!%p159_p10), %s1949_s2, %s1204_s6 }
  0x12   : > { %s1096_s7 = sshll.u32 (!%p159_p10), %s1871_s5, 4  ;;  %s1902_s12 = scalar_lea.sflag (!%p159_p10), [#allocation4], %s188_s3  ;;  %s1897_s7 = int_to_ptr.vmem [resolvable:$true] %s1096_s7 }
  0x13   : > { %s1310_s18 = scalar_lea.vmem (!%p159_p10), %s1897_s7, 1024  ;;  %s1404_s20 = smov (!%p159_p10), [#allocation3]  }
  0x14   : > { %v1388_v0 = vmov 0   ;;  %s1960_s23 = smov (!%p192_p11, %s1195_s23), 15  ;;  %v1389_v9 = vmov 1   ;;  %v1390_v10 = vmov 2   ;;  %v1391_v11 = vmov 3   ;;  %p1311_p12 = scmp.ne.s32.totalorder %s1897_s7, %s1310_s18 }
  0x15   : > { %1279 = vset.pattern.permute.xlu1 %v1388_v0  ;;  %1278 = vset.pattern.permute.xlu0 %v1388_v0  ;;  %s1196_s24 = sshll.u32 %s1960_s23, 3  ;;  %v1392_v12 = vmov 4   ;;  %v1393_v13 = vmov 5   ;;  %v1394_v14 = vmov 6   ;;  %v1395_v15 = vmov 7   ;;  %s1314_s23 = sshll.u32 %s1404_s20, 4  ;;  %s1315_s23 = int_to_ptr.vmem [resolvable:$false] %s1314_s23 }
  0x16   : > { %s198_s27 = scalar_lea.vmem %s1947_s0, %s1196_s24  ;;  %v1396_v18 = vmov 8   ;;  %v1397_v25 = vmov 9   ;;  %s1592_s30 = scalar_lea.vmem %s1948_s1, %s1196_s24  ;;  %v1398_v36 = vmov 10   ;;  %v1399_v56 = vmov 11  }
  0x17   : > { %v1486_v1 = vld [vmem:[%s198_s27 + $0x10] sm:$0xff]  ;;  %v1488_v2 = vld [vmem:[%s198_s27] sm:$0xff]  ;;  %v1492_v3 = vld [vmem:[%s198_s27 + $0x18] sm:$0xff]  ;;  %p1312_p13 = pnand %p1311_p12, %p1462_p4  ;;  %s1316_s24 = scalar_lea.vmem %s1315_s23, 2048 }
  0x18   : > { %268 = vperm.xlu1 %1279, %v1486_v1   ;;  %258 = vperm.xlu0 %1278, %v1488_v2   ;;  %v1494_v4 = vld [vmem:[%s198_s27 + $0x8] sm:$0xff]  ;;  %v1500_v6 = vld [vmem:[%s198_s27 + $0x20] sm:$0xff]  ;;  %v1504_v7 = vld [vmem:[%s198_s27 + $0x38] sm:$0xff]  ;;  %p1317_p1 = scmp.lt.s32.totalorder %s1897_s7, %s1315_s23  ;;  %p1318_p2 = scmp.lt.s32.totalorder %s1316_s24, %s1310_s18 }
  0x19   : > { %v1498_v5 = vld [vmem:[%s198_s27 + $0x28] sm:$0xff]  ;;  %v1506_v8 = vld [vmem:[%s198_s27 + $0x30] sm:$0xff]  ;;  %v1603_v33 = vld [vmem:[%s1592_s30 + $0x20] sm:$0xff]  ;;  %p1313_p0 = pneg %p1312_p13 }
  0x1a   : > { %v1595_v30 = vld [vmem:[%s1592_s30 + $0x8] sm:$0xff]  ;;  %vm252_vm2 = vcmp.eq.s32.totalorder %v1603_v33, 0  ;;  %v1614_v38 = vld [vmem:[%s1592_s30 + $0x30] sm:$0xff]  ;;  %v1618_v42 = vld [vmem:[%s1592_s30] sm:$0xff]  ;;  %vm310_vm4 = vcmp.eq.s32.totalorder %v1603_v33, 1  ;;  %vm360_vm6 = vcmp.eq.s32.totalorder %v1603_v33, 2  ;;  %p1319_p3 = por %p1318_p2, %p1317_p1 }
  0x1b   : > { %vm249_vm0 = vcmp.eq.s32.totalorder %v1595_v30, 0  ;;  %vm307_vm1 = vcmp.eq.s32.totalorder %v1595_v30, 1  ;;  %vm357_vm3 = vcmp.eq.s32.totalorder %v1595_v30, 2  ;;  %vm254_vm5 = vcmp.eq.s32.totalorder %v1614_v38, 0  ;;  %v1639_v54 = vld [vmem:[%s1592_s30 + $0x18] sm:$0xff]  ;;  %v1651_v59 = vld [vmem:[%s1592_s30 + $0x28] sm:$0xff] }
  0x1c   : > { %273 = vperm.xlu1 %1279, %v1492_v3   ;;  %263 = vperm.xlu0 %1278, %v1494_v4   ;;  %vm248_vm7 = vcmp.eq.s32.totalorder %v1618_v42, 0  ;;  %vm312_vm8 = vcmp.eq.s32.totalorder %v1614_v38, 1  ;;  %vm362_vm9 = vcmp.eq.s32.totalorder %v1614_v38, 2  ;;  %vm306_vm10 = vcmp.eq.s32.totalorder %v1618_v42, 1  ;;  %p1320_p5 = pnand %p1319_p3, %p1313_p0 }
  0x1d   : > { %vm356_vm11 = vcmp.eq.s32.totalorder %v1618_v42, 2  ;;  %vm406_vm12 = vcmp.eq.s32.totalorder %v1618_v42, 3  ;;  %vm251_vm13 = vcmp.eq.s32.totalorder %v1639_v54, 0  ;;  %vm309_vm14 = vcmp.eq.s32.totalorder %v1639_v54, 1 }
  0x1e   : > { %vm359_vm15 = vcmp.eq.s32.totalorder %v1639_v54, 2 }
  0x20   : > { %283 = vperm.xlu1 %1279, %v1498_v5   ;;  %278 = vperm.xlu0 %1278, %v1500_v6  }
  0x24   : > { %293 = vperm.xlu1 %1279, %v1504_v7   ;;  %288 = vperm.xlu0 %1278, %v1506_v8  }
  0x28   : > { %1281 = vset.pattern.permute.xlu1 %v1389_v9  ;;  %1280 = vset.pattern.permute.xlu0 %v1389_v9 }
  0x29   : > { %319 = vperm.xlu1 %1281, %v1494_v4   ;;  %315 = vperm.xlu0 %1280, %v1488_v2  }
  0x2d   : > { %323 = vperm.xlu1 %1281, %v1486_v1   ;;  %327 = vperm.xlu0 %1280, %v1492_v3  }
  0x31   : > { %331 = vperm.xlu1 %1281, %v1500_v6   ;;  %335 = vperm.xlu0 %1280, %v1498_v5  }
  0x35   : > { %339 = vperm.xlu1 %1281, %v1506_v8   ;;  %343 = vperm.xlu0 %1280, %v1504_v7  }
  0x39   : > { %1282 = vset.pattern.permute.xlu1 %v1390_v10  ;;  %1283 = vset.pattern.permute.xlu0 %v1390_v10  ;;  %v1664_v10 = vld [vmem:[%s1592_s30 + $0x38] sm:$0xff] }
  0x3a   : > { %365 = vperm.xlu1 %1282, %v1488_v2   ;;  %369 = vperm.xlu0 %1283, %v1494_v4  }
  0x3e   : > { %373 = vperm.xlu1 %1282, %v1486_v1   ;;  %381 = vperm.xlu0 %1283, %v1500_v6  }
  0x42   : > { %377 = vperm.xlu1 %1282, %v1492_v3   ;;  %389 = vperm.xlu0 %1283, %v1506_v8  }
  0x46   : > { %385 = vperm.xlu1 %1282, %v1498_v5   ;;  %1284 = vset.pattern.permute.xlu0 %v1391_v11 }
  0x47   : > { %415 = vperm.xlu0 %1284, %v1488_v2  }
  0x4a   : > { %393 = vperm.xlu1 %1282, %v1504_v7  }
  0x4b   : > { %427 = vperm.xlu0 %1284, %v1492_v3  }
  0x4e   : > { %1285 = vset.pattern.permute.xlu1 %v1391_v11 }
  0x4f   : > { %419 = vperm.xlu1 %1285, %v1494_v4   ;;  %435 = vperm.xlu0 %1284, %v1498_v5  }
  0x53   : > { %423 = vperm.xlu1 %1285, %v1486_v1   ;;  %443 = vperm.xlu0 %1284, %v1504_v7  }
  0x57   : > { %431 = vperm.xlu1 %1285, %v1500_v6   ;;  %1287 = vset.pattern.permute.xlu0 %v1392_v12 }
  0x58   : > { %469 = vperm.xlu0 %1287, %v1494_v4  }
  0x5b   : > { %439 = vperm.xlu1 %1285, %v1506_v8  }
  0x5c   : > { %481 = vperm.xlu0 %1287, %v1500_v6  }
  0x5f   : > { %1286 = vset.pattern.permute.xlu1 %v1392_v12 }
  0x60   : > { %465 = vperm.xlu1 %1286, %v1488_v2   ;;  %489 = vperm.xlu0 %1287, %v1506_v8  }
  0x64   : > { %473 = vperm.xlu1 %1286, %v1486_v1   ;;  %1288 = vset.pattern.permute.xlu0 %v1393_v13 }
  0x65   : > { %515 = vperm.xlu0 %1288, %v1488_v2  }
  0x68   : > { %477 = vperm.xlu1 %1286, %v1492_v3  }
  0x69   : > { %527 = vperm.xlu0 %1288, %v1492_v3  }
  0x6c   : > { %485 = vperm.xlu1 %1286, %v1498_v5  }
  0x6d   : > { %535 = vperm.xlu0 %1288, %v1498_v5  }
  0x70   : > { %493 = vperm.xlu1 %1286, %v1504_v7  }
  0x71   : > { %543 = vperm.xlu0 %1288, %v1504_v7  }
  0x74   : > { %1289 = vset.pattern.permute.xlu1 %v1393_v13 }
  0x75   : > { %519 = vperm.xlu1 %1289, %v1494_v4   ;;  %1291 = vset.pattern.permute.xlu0 %v1394_v14 }
  0x76   : > { %569 = vperm.xlu0 %1291, %v1494_v4  }
  0x79   : > { %523 = vperm.xlu1 %1289, %v1486_v1  }
  0x7a   : > { %581 = vperm.xlu0 %1291, %v1500_v6  }
  0x7d   : > { %531 = vperm.xlu1 %1289, %v1500_v6  }
  0x7e   : > { %589 = vperm.xlu0 %1291, %v1506_v8  }
  0x81   : > { %539 = vperm.xlu1 %1289, %v1506_v8  }
  0x82   : > { %1292 = vset.pattern.permute.xlu0 %v1395_v15 }
  0x83   : > { %615 = vperm.xlu0 %1292, %v1488_v2  }
  0x85   : > { %1290 = vset.pattern.permute.xlu1 %v1394_v14 }
  0x86   : > { %565 = vperm.xlu1 %1290, %v1488_v2  }
  0x87   : > { %627 = vperm.xlu0 %1292, %v1492_v3  }
  0x8a   : > { %573 = vperm.xlu1 %1290, %v1486_v1  }
  0x8b   : > { %635 = vperm.xlu0 %1292, %v1498_v5  }
  0x8e   : > { %577 = vperm.xlu1 %1290, %v1492_v3  }
  0x8f   : > { %643 = vperm.xlu0 %1292, %v1504_v7  }
  0x92   : > { %585 = vperm.xlu1 %1290, %v1498_v5  }
  0x93   : > { %v1561_v16 = vpop.permute.xlu1 %268  ;;  %v1563_v17 = vpop.permute.xlu0 %258  ;;  %1295 = vset.pattern.permute.xlu0 %v1396_v18 }
  0x94   : > { %669 = vperm.xlu0 %1295, %v1494_v4   ;;  %v296_v50 = vsel %vm248_vm7, %v1563_v17, 0.0  ;;  %vm313_vm7 = vcmp.eq.s32.totalorder %v1664_v10, 1 }
  0x96   : > { %593 = vperm.xlu1 %1290, %v1504_v7  }
  0x97   : > { %v1567_v19 = vpop.permute.xlu1 %273  ;;  %v264_v20 = vpop.permute.xlu0 %263 }
  0x98   : > { %681 = vperm.xlu0 %1295, %v1500_v6   ;;  %v297_v37 = vsel %vm249_vm0, %v264_v20, 0.0  ;;  %v299_v63 = vsel %vm251_vm13, %v1567_v19, 0.0  ;;  %vm409_vm0 = vcmp.eq.s32.totalorder %v1639_v54, 3  ;;  %vm460_vm13 = vcmp.eq.s32.totalorder %v1603_v33, 4 }
  0x9a   : > { %1293 = vset.pattern.permute.xlu1 %v1395_v15 }
  0x9b   : > { %v1570_v21 = vpop.permute.xlu1 %283  ;;  %619 = vperm.xlu1 %1293, %v1494_v4   ;;  %v279_v22 = vpop.permute.xlu0 %278 }
  0x9c   : > { %689 = vperm.xlu0 %1295, %v1506_v8   ;;  %v300_v43 = vsel %vm252_vm2, %v279_v22, 0.0  ;;  %vm311_vm2 = vcmp.eq.s32.totalorder %v1651_v59, 1 }
  0x9f   : > { %v1574_v23 = vpop.permute.xlu1 %293  ;;  %623 = vperm.xlu1 %1293, %v1486_v1   ;;  %v289_v24 = vpop.permute.xlu0 %288 }
  0xa0   : > { %1296 = vset.pattern.permute.xlu0 %v1397_v25  ;;  %v302_v48 = vsel %vm254_vm5, %v289_v24, 0.0  ;;  %vm411_vm5 = vcmp.eq.s32.totalorder %v1651_v59, 3 }
  0xa1   : > { %715 = vperm.xlu0 %1296, %v1488_v2  }
  0xa3   : > { %631 = vperm.xlu1 %1293, %v1500_v6  }
  0xa4   : > { %v320_v26 = vpop.permute.xlu1 %319  ;;  %v316_v27 = vpop.permute.xlu0 %315 }
  0xa5   : > { %727 = vperm.xlu0 %1296, %v1492_v3   ;;  %v347_v39 = vsel %vm307_vm1, %v320_v26, %v297_v37  ;;  %v346_v57 = vsel %vm306_vm10, %v316_v27, %v296_v50  ;;  %vm253_vm1 = vcmp.eq.s32.totalorder %v1651_v59, 0  ;;  %vm410_vm10 = vcmp.eq.s32.totalorder %v1603_v33, 3 }
  0xa6   : > { %v301_v14 = vsel %vm253_vm1, %v1570_v21, 0.0  ;;  %vm459_vm1 = vcmp.eq.s32.totalorder %v1639_v54, 4 }
  0xa7   : > { %639 = vperm.xlu1 %1293, %v1506_v8  }
  0xa8   : > { %v1582_v28 = vpop.permute.xlu1 %323  ;;  %v1584_v29 = vpop.permute.xlu0 %327 }
  0xa9   : > { %735 = vperm.xlu0 %1296, %v1498_v5   ;;  %v349_v0 = vsel %vm309_vm14, %v1584_v29, %v299_v63  ;;  %vm456_vm14 = vcmp.eq.s32.totalorder %v1618_v42, 4 }
  0xab   : > { %1294 = vset.pattern.permute.xlu1 %v1396_v18 }
  0xac   : > { %v332_v31 = vpop.permute.xlu1 %331  ;;  %665 = vperm.xlu1 %1294, %v1488_v2   ;;  %v1598_v32 = vpop.permute.xlu0 %335 }
  0xad   : > { %743 = vperm.xlu0 %1296, %v1504_v7   ;;  %v350_v45 = vsel %vm310_vm4, %v332_v31, %v300_v43  ;;  %vm407_vm4 = vcmp.eq.s32.totalorder %v1595_v30, 3  ;;  %v351_v15 = vsel %vm311_vm2, %v1598_v32, %v301_v14  ;;  %v1400_v31 = vmov 12  }
  0xae   : > { %vm509_vm2 = vcmp.eq.s32.totalorder %v1639_v54, 5 }
  0xb0   : > { %v340_v34 = vpop.permute.xlu1 %339  ;;  %673 = vperm.xlu1 %1294, %v1486_v1   ;;  %v1606_v35 = vpop.permute.xlu0 %343 }
  0xb1   : > { %1299 = vset.pattern.permute.xlu0 %v1398_v36  ;;  %v352_v51 = vsel %vm312_vm8, %v340_v34, %v302_v48  ;;  %vm363_vm8 = vcmp.eq.s32.totalorder %v1664_v10, 2 }
  0xb2   : > { %769 = vperm.xlu0 %1299, %v1494_v4  }
  0xb4   : > { %677 = vperm.xlu1 %1294, %v1492_v3  }
  0xb5   : > { %v366_v40 = vpop.permute.xlu1 %365  ;;  %v370_v41 = vpop.permute.xlu0 %369 }
  0xb6   : > { %v1621_v44 = vsel %vm357_vm3, %v370_v41, %v347_v39  ;;  %781 = vperm.xlu0 %1299, %v1500_v6   ;;  %v396_v60 = vsel %vm356_vm11, %v366_v40, %v346_v57  ;;  %vm361_vm3 = vcmp.eq.s32.totalorder %v1651_v59, 2  ;;  %vm457_vm11 = vcmp.eq.s32.totalorder %v1595_v30, 4 }
  0xb8   : > { %685 = vperm.xlu1 %1294, %v1498_v5  }
  0xb9   : > { %v1628_v46 = vpop.permute.xlu1 %373  ;;  %v382_v47 = vpop.permute.xlu0 %381 }
  0xba   : > { %v1631_v49 = vsel %vm360_vm6, %v382_v47, %v350_v45  ;;  %789 = vperm.xlu0 %1299, %v1506_v8   ;;  %vm255_vm6 = vcmp.eq.s32.totalorder %v1664_v10, 0  ;;  %v1401_v47 = vmov 13  }
  0xbb   : > { %v303_v22 = vsel %vm255_vm6, %v1574_v23, 0.0  ;;  %vm513_vm6 = vcmp.eq.s32.totalorder %v1664_v10, 5 }
  0xbc   : > { %693 = vperm.xlu1 %1294, %v1504_v7   ;;  %v353_v24 = vsel %vm313_vm7, %v1606_v35, %v303_v22 }
  0xbd   : > { %v378_v52 = vpop.permute.xlu1 %377  ;;  %v390_v53 = vpop.permute.xlu0 %389 }
  0xbe   : > { %v1641_v55 = vsel %vm362_vm9, %v390_v53, %v352_v51  ;;  %1300 = vset.pattern.permute.xlu0 %v1399_v56  ;;  %v399_v11 = vsel %vm359_vm15, %v378_v52, %v349_v0  ;;  %vm413_vm9 = vcmp.eq.s32.totalorder %v1664_v10, 3  ;;  %vm462_vm15 = vcmp.eq.s32.totalorder %v1614_v38, 4 }
  0xbf   : > { %815 = vperm.xlu0 %1300, %v1488_v2  }
  0xc0   : > { %1297 = vset.pattern.permute.xlu1 %v1397_v25 }
  0xc1   : > { %719 = vperm.xlu1 %1297, %v1494_v4   ;;  %v386_v58 = vpop.permute.xlu1 %385 }
  0xc2   : > { %v416_v61 = vpop.permute.xlu0 %415  ;;  %v401_v17 = vsel %vm361_vm3, %v386_v58, %v351_v15  ;;  %vm461_vm3 = vcmp.eq.s32.totalorder %v1651_v59, 4 }
  0xc3   : > { %v1655_v62 = vsel %vm406_vm12, %v416_v61, %v396_v60  ;;  %827 = vperm.xlu0 %1300, %v1492_v3   ;;  %vm412_vm12 = vcmp.eq.s32.totalorder %v1614_v38, 3 }
  0xc5   : > { %723 = vperm.xlu1 %1297, %v1486_v1   ;;  %v394_v9 = vpop.permute.xlu1 %393 }
  0xc6   : > { %v428_v12 = vpop.permute.xlu0 %427  ;;  %v403_v25 = vsel %vm363_vm8, %v394_v9, %v353_v24 }
  0xc7   : > { %v1668_v13 = vsel %vm409_vm0, %v428_v12, %v399_v11  ;;  %835 = vperm.xlu0 %1300, %v1498_v5   ;;  %vm506_vm0 = vcmp.eq.s32.totalorder %v1618_v42, 5  ;;  %v1402_v11 = vmov 14  }
  0xc9   : > { %731 = vperm.xlu1 %1297, %v1500_v6  }
  0xca   : > { %v420_v18 = vpop.permute.xlu1 %419  ;;  %v436_v19 = vpop.permute.xlu0 %435 }
  0xcb   : > { %v447_v20 = vsel %vm407_vm4, %v420_v18, %v1621_v44  ;;  %v451_v21 = vsel %vm411_vm5, %v436_v19, %v401_v17  ;;  %843 = vperm.xlu0 %1300, %v1504_v7   ;;  %vm511_vm4 = vcmp.eq.s32.totalorder %v1651_v59, 5  ;;  %vm463_vm5 = vcmp.eq.s32.totalorder %v1664_v10, 4 }
  0xcd   : > { %739 = vperm.xlu1 %1297, %v1506_v8  }
  0xce   : > { %v1685_v26 = vpop.permute.xlu1 %423  ;;  %v444_v27 = vpop.permute.xlu0 %443 }
  0xcf   : > { %v453_v29 = vsel %vm413_vm9, %v444_v27, %v403_v25  ;;  %1303 = vset.pattern.permute.xlu0 %v1400_v31  ;;  %vm507_vm9 = vcmp.eq.s32.totalorder %v1595_v30, 5  ;;  %v1403_v27 = vmov 15  }
  0xd0   : > { %869 = vperm.xlu0 %1303, %v1494_v4  }
  0xd1   : > { %1298 = vset.pattern.permute.xlu1 %v1398_v36 }
  0xd2   : > { %765 = vperm.xlu1 %1298, %v1488_v2   ;;  %v432_v23 = vpop.permute.xlu1 %431 }
  0xd3   : > { %v450_v32 = vsel %vm410_vm10, %v432_v23, %v1631_v49  ;;  %v470_v34 = vpop.permute.xlu0 %469 }
  0xd4   : > { %v1694_v35 = vsel %vm457_vm11, %v470_v34, %v447_v20  ;;  %881 = vperm.xlu0 %1303, %v1500_v6   ;;  %vm557_vm11 = vcmp.eq.s32.totalorder %v1595_v30, 6 }
  0xd6   : > { %773 = vperm.xlu1 %1298, %v1486_v1   ;;  %v440_v37 = vpop.permute.xlu1 %439 }
  0xd7   : > { %v452_v36 = vsel %vm412_vm12, %v440_v37, %v1641_v55  ;;  %v482_v39 = vpop.permute.xlu0 %481 }
  0xd8   : > { %v1701_v40 = vsel %vm460_vm13, %v482_v39, %v450_v32  ;;  %889 = vperm.xlu0 %1303, %v1506_v8  }
  0xda   : > { %777 = vperm.xlu1 %1298, %v1492_v3  }
  0xdb   : > { %v466_v41 = vpop.permute.xlu1 %465  ;;  %v490_v43 = vpop.permute.xlu0 %489 }
  0xdc   : > { %v496_v44 = vsel %vm456_vm14, %v466_v41, %v1655_v62  ;;  %v1708_v45 = vsel %vm462_vm15, %v490_v43, %v452_v36  ;;  %1304 = vset.pattern.permute.xlu0 %v1401_v47  ;;  %v1733_v62 = vld [vmem:[%s1592_s30 + $0x10] sm:$0xff]  ;;  %vm510_vm15 = vcmp.eq.s32.totalorder %v1603_v33, 5 }
  0xdd   : > { %915 = vperm.xlu0 %1304, %v1488_v2   ;;  %vm250_vm7 = vcmp.eq.s32.totalorder %v1733_v62, 0  ;;  %vm308_vm8 = vcmp.eq.s32.totalorder %v1733_v62, 1  ;;  %vm358_vm10 = vcmp.eq.s32.totalorder %v1733_v62, 2  ;;  %vm408_vm12 = vcmp.eq.s32.totalorder %v1733_v62, 3 }
  0xde   : > { %785 = vperm.xlu1 %1298, %v1498_v5   ;;  %v298_v12 = vsel %vm250_vm7, %v1561_v16, 0.0  ;;  %vm458_vm13 = vcmp.eq.s32.totalorder %v1733_v62, 4  ;;  %vm508_vm14 = vcmp.eq.s32.totalorder %v1733_v62, 5  ;;  %vm609_vm7 = vcmp.eq.s32.totalorder %v1639_v54, 7 }
  0xdf   : > { %v474_v48 = vpop.permute.xlu1 %473  ;;  %v348_v14 = vsel %vm308_vm8, %v1582_v28, %v298_v12  ;;  %vm561_vm8 = vcmp.eq.s32.totalorder %v1651_v59, 6 }
  0xe0   : > { %v516_v49 = vpop.permute.xlu0 %515  ;;  %v398_v18 = vsel %vm358_vm10, %v1628_v46, %v348_v14  ;;  %vm563_vm10 = vcmp.eq.s32.totalorder %v1664_v10, 6 }
  0xe1   : > { %v1714_v50 = vsel %vm506_vm0, %v516_v49, %v496_v44  ;;  %927 = vperm.xlu0 %1304, %v1492_v3   ;;  %v448_v16 = vsel %vm408_vm12, %v1685_v26, %v398_v18  ;;  %vm560_vm0 = vcmp.eq.s32.totalorder %v1603_v33, 6  ;;  %vm607_vm12 = vcmp.eq.s32.totalorder %v1595_v30, 7 }
  0xe2   : > { %793 = vperm.xlu1 %1298, %v1504_v7   ;;  %v498_v20 = vsel %vm458_vm13, %v474_v48, %v448_v16  ;;  %vm657_vm13 = vcmp.eq.s32.totalorder %v1595_v30, 8 }
  0xe3   : > { %v478_v51 = vpop.permute.xlu1 %477 }
  0xe4   : > { %v499_v52 = vsel %vm459_vm1, %v478_v51, %v1668_v13  ;;  %v528_v53 = vpop.permute.xlu0 %527  ;;  %vm512_vm1 = vcmp.eq.s32.totalorder %v1614_v38, 5 }
  0xe5   : > { %v1721_v55 = vsel %vm509_vm2, %v528_v53, %v499_v52  ;;  %935 = vperm.xlu0 %1304, %v1498_v5   ;;  %vm562_vm2 = vcmp.eq.s32.totalorder %v1614_v38, 6 }
  0xe6   : > { %1301 = vset.pattern.permute.xlu1 %v1399_v56 }
  0xe7   : > { %819 = vperm.xlu1 %1301, %v1494_v4   ;;  %v486_v57 = vpop.permute.xlu1 %485 }
  0xe8   : > { %v501_v58 = vsel %vm461_vm3, %v486_v57, %v451_v21  ;;  %v536_v60 = vpop.permute.xlu0 %535  ;;  %vm556_vm3 = vcmp.eq.s32.totalorder %v1618_v42, 6 }
  0xe9   : > { %v1728_v61 = vsel %vm511_vm4, %v536_v60, %v501_v58  ;;  %943 = vperm.xlu0 %1304, %v1504_v7   ;;  %vm606_vm4 = vcmp.eq.s32.totalorder %v1618_v42, 7 }
  0xeb   : > { %823 = vperm.xlu1 %1301, %v1486_v1   ;;  %v494_v56 = vpop.permute.xlu1 %493 }
  0xec   : > { %v503_v63 = vsel %vm463_vm5, %v494_v56, %v453_v29  ;;  %v544_v0 = vpop.permute.xlu0 %543  ;;  %vm558_vm5 = vcmp.eq.s32.totalorder %v1733_v62, 6 }
  0xed   : > { %v1738_v9 = vsel %vm513_vm6, %v544_v0, %v503_v63  ;;  %1307 = vset.pattern.permute.xlu0 %v1402_v11  ;;  %vm559_vm6 = vcmp.eq.s32.totalorder %v1639_v54, 6 }
  0xee   : > { %969 = vperm.xlu0 %1307, %v1494_v4  }
  0xef   : > { %831 = vperm.xlu1 %1301, %v1500_v6  }
  0xf0   : > { %v520_v13 = vpop.permute.xlu1 %519 }
  0xf1   : > { %v547_v15 = vsel %vm507_vm9, %v520_v13, %v1694_v35  ;;  %v570_v17 = vpop.permute.xlu0 %569  ;;  %vm611_vm9 = vcmp.eq.s32.totalorder %v1651_v59, 7 }
  0xf2   : > { %v1753_v19 = vsel %vm557_vm11, %v570_v17, %v547_v15  ;;  %981 = vperm.xlu0 %1307, %v1500_v6   ;;  %vm613_vm11 = vcmp.eq.s32.totalorder %v1664_v10, 7 }
  0xf3   : > { %839 = vperm.xlu1 %1301, %v1506_v8  }
  0xf4   : > { %v524_v21 = vpop.permute.xlu1 %523 }
  0xf5   : > { %v548_v28 = vsel %vm508_vm14, %v524_v21, %v498_v20  ;;  %v582_v22 = vpop.permute.xlu0 %581  ;;  %vm608_vm14 = vcmp.eq.s32.totalorder %v1733_v62, 7 }
  0xf6   : > { %989 = vperm.xlu0 %1307, %v1506_v8  }
  0xf7   : > { %1302 = vset.pattern.permute.xlu1 %v1400_v31 }
  0xf8   : > { %865 = vperm.xlu1 %1302, %v1488_v2   ;;  %v532_v46 = vpop.permute.xlu1 %531 }
  0xf9   : > { %v550_v24 = vsel %vm510_vm15, %v532_v46, %v1701_v40  ;;  %v590_v25 = vpop.permute.xlu0 %589  ;;  %vm610_vm15 = vcmp.eq.s32.totalorder %v1603_v33, 7 }
  0xfa   : > { %v1765_v26 = vsel %vm560_vm0, %v582_v22, %v550_v24  ;;  %1308 = vset.pattern.permute.xlu0 %v1403_v27  ;;  %vm660_vm0 = vcmp.eq.s32.totalorder %v1603_v33, 8 }
  0xfb   : > { %1015 = vperm.xlu0 %1308, %v1488_v2  }
  0xfc   : > { %873 = vperm.xlu1 %1302, %v1486_v1   ;;  %v540_v29 = vpop.permute.xlu1 %539 }
  0xfd   : > { %v552_v31 = vsel %vm512_vm1, %v540_v29, %v1708_v45  ;;  %vm612_vm1 = vcmp.eq.s32.totalorder %v1614_v38, 7 }
  0xfe   : > { %v602_v23 = vsel %vm562_vm2, %v590_v25, %v552_v31  ;;  %v616_v32 = vpop.permute.xlu0 %615  ;;  %vm662_vm2 = vcmp.eq.s32.totalorder %v1614_v38, 8 }
  0xff   : > { %1027 = vperm.xlu0 %1308, %v1492_v3  }
 0x100   : > { %877 = vperm.xlu1 %1302, %v1492_v3  }
 0x101   : > { %v566_v34 = vpop.permute.xlu1 %565 }
 0x102   : > { %v596_v35 = vsel %vm556_vm3, %v566_v34, %v1714_v50  ;;  %v628_v36 = vpop.permute.xlu0 %627  ;;  %vm656_vm3 = vcmp.eq.s32.totalorder %v1618_v42, 8 }
 0x103   : > { %v646_v37 = vsel %vm606_vm4, %v616_v32, %v596_v35  ;;  %1035 = vperm.xlu0 %1308, %v1498_v5   ;;  %vm706_vm4 = vcmp.eq.s32.totalorder %v1618_v42, 9 }
 0x104   : > { %885 = vperm.xlu1 %1302, %v1498_v5  }
 0x105   : > { %v574_v39 = vpop.permute.xlu1 %573 }
 0x106   : > { %v598_v40 = vsel %vm558_vm5, %v574_v39, %v548_v28  ;;  %v636_v43 = vpop.permute.xlu0 %635  ;;  %vm658_vm5 = vcmp.eq.s32.totalorder %v1733_v62, 8 }
 0x107   : > { %1043 = vperm.xlu0 %1308, %v1504_v7  }
 0x108   : > { %893 = vperm.xlu1 %1302, %v1504_v7  }
 0x109   : > { %v578_v41 = vpop.permute.xlu1 %577 }
 0x10a   : > { %v599_v44 = vsel %vm559_vm6, %v578_v41, %v1721_v55  ;;  %v644_v51 = vpop.permute.xlu0 %643  ;;  %vm659_vm6 = vcmp.eq.s32.totalorder %v1639_v54, 8 }
 0x10b   : > { %v649_v45 = vsel %vm609_vm7, %v628_v36, %v599_v44  ;;  %vm709_vm7 = vcmp.eq.s32.totalorder %v1639_v54, 9 }
 0x10c   : > { %1305 = vset.pattern.permute.xlu1 %v1401_v47 }
 0x10d   : > { %919 = vperm.xlu1 %1305, %v1494_v4   ;;  %v586_v48 = vpop.permute.xlu1 %585 }
 0x10e   : > { %v601_v49 = vsel %vm561_vm8, %v586_v48, %v1728_v61  ;;  %vm661_vm8 = vcmp.eq.s32.totalorder %v1651_v59, 8 }
 0x10f   : > { %v651_v50 = vsel %vm611_vm9, %v636_v43, %v601_v49  ;;  %v670_v47 = vpop.permute.xlu0 %669  ;;  %vm711_vm9 = vcmp.eq.s32.totalorder %v1651_v59, 9 }
 0x111   : > { %923 = vperm.xlu1 %1305, %v1486_v1   ;;  %v594_v52 = vpop.permute.xlu1 %593 }
 0x112   : > { %v603_v53 = vsel %vm563_vm10, %v594_v52, %v1738_v9  ;;  %vm663_vm10 = vcmp.eq.s32.totalorder %v1664_v10, 8 }
 0x113   : > { %v653_v55 = vsel %vm613_vm11, %v644_v51, %v603_v53  ;;  %v682_v61 = vpop.permute.xlu0 %681  ;;  %vm713_vm11 = vcmp.eq.s32.totalorder %v1664_v10, 9 }
 0x115   : > { %931 = vperm.xlu1 %1305, %v1500_v6  }
 0x116   : > { %v620_v57 = vpop.permute.xlu1 %619 }
 0x117   : > { %v647_v58 = vsel %vm607_vm12, %v620_v57, %v1753_v19  ;;  %v690_v12 = vpop.permute.xlu0 %689  ;;  %vm707_vm12 = vcmp.eq.s32.totalorder %v1595_v30, 9 }
 0x118   : > { %v697_v60 = vsel %vm657_vm13, %v670_v47, %v647_v58  ;;  %vm757_vm13 = vcmp.eq.s32.totalorder %v1595_v30, 10 }
 0x119   : > { %939 = vperm.xlu1 %1305, %v1506_v8  }
 0x11a   : > { %v624_v56 = vpop.permute.xlu1 %623 }
 0x11b   : > { %v648_v63 = vsel %vm608_vm14, %v624_v56, %v598_v40  ;;  %vm708_vm14 = vcmp.eq.s32.totalorder %v1733_v62, 9 }
 0x11d   : > { %1306 = vset.pattern.permute.xlu1 %v1402_v11  ;;  %v716_v11 = vpop.permute.xlu0 %715 }
 0x11e   : > { %965 = vperm.xlu1 %1306, %v1488_v2   ;;  %v632_v0 = vpop.permute.xlu1 %631 }
 0x11f   : > { %v650_v9 = vsel %vm610_vm15, %v632_v0, %v1765_v26  ;;  %vm710_vm15 = vcmp.eq.s32.totalorder %v1603_v33, 9 }
 0x120   : > { %v700_v13 = vsel %vm660_vm0, %v682_v61, %v650_v9  ;;  %vm760_vm0 = vcmp.eq.s32.totalorder %v1603_v33, 10 }
 0x121   : > { %v728_v16 = vpop.permute.xlu0 %727 }
 0x122   : > { %973 = vperm.xlu1 %1306, %v1486_v1   ;;  %v640_v14 = vpop.permute.xlu1 %639 }
 0x123   : > { %v652_v15 = vsel %vm612_vm1, %v640_v14, %v602_v23  ;;  %vm712_vm1 = vcmp.eq.s32.totalorder %v1614_v38, 9 }
 0x124   : > { %v702_v17 = vsel %vm662_vm2, %v690_v12, %v652_v15  ;;  %vm762_vm2 = vcmp.eq.s32.totalorder %v1614_v38, 10 }
 0x126   : > { %977 = vperm.xlu1 %1306, %v1492_v3   ;;  %v736_v3 = vpop.permute.xlu0 %735 }
 0x127   : > { %v666_v2 = vpop.permute.xlu1 %665 }
 0x128   : > { %v696_v18 = vsel %vm656_vm3, %v666_v2, %v646_v37  ;;  %vm756_vm3 = vcmp.eq.s32.totalorder %v1618_v42, 10 }
 0x129   : > { %v746_v19 = vsel %vm706_vm4, %v716_v11, %v696_v18  ;;  %vm806_vm4 = vcmp.eq.s32.totalorder %v1618_v42, 11 }
 0x12a   : > { %985 = vperm.xlu1 %1306, %v1498_v5  }
 0x12b   : > { %v674_v20 = vpop.permute.xlu1 %673 }
 0x12c   : > { %v698_v21 = vsel %vm658_vm5, %v674_v20, %v648_v63  ;;  %vm758_vm5 = vcmp.eq.s32.totalorder %v1733_v62, 10 }
 0x12e   : > { %993 = vperm.xlu1 %1306, %v1504_v7   ;;  %v744_v7 = vpop.permute.xlu0 %743 }
 0x12f   : > { %v678_v28 = vpop.permute.xlu1 %677 }
 0x130   : > { %v699_v22 = vsel %vm659_vm6, %v678_v28, %v649_v45  ;;  %vm759_vm6 = vcmp.eq.s32.totalorder %v1639_v54, 10 }
 0x131   : > { %v749_v46 = vsel %vm709_vm7, %v728_v16, %v699_v22  ;;  %vm809_vm7 = vcmp.eq.s32.totalorder %v1639_v54, 11 }
 0x132   : > { %1309 = vset.pattern.permute.xlu1 %v1403_v27 }
 0x133   : > { %1019 = vperm.xlu1 %1309, %v1494_v4   ;;  %v686_v5 = vpop.permute.xlu1 %685  ;;  %v770_v4 = vpop.permute.xlu0 %769 }
 0x134   : > { %v701_v24 = vsel %vm661_vm8, %v686_v5, %v651_v50  ;;  %vm761_vm8 = vcmp.eq.s32.totalorder %v1651_v59, 10 }
 0x135   : > { %v751_v25 = vsel %vm711_vm9, %v736_v3, %v701_v24  ;;  %vm811_vm9 = vcmp.eq.s32.totalorder %v1651_v59, 11 }
 0x137   : > { %1023 = vperm.xlu1 %1309, %v1486_v1   ;;  %v694_v26 = vpop.permute.xlu1 %693  ;;  %v782_v34 = vpop.permute.xlu0 %781 }
 0x138   : > { %v703_v29 = vsel %vm663_vm10, %v694_v26, %v653_v55  ;;  %vm763_vm10 = vcmp.eq.s32.totalorder %v1664_v10, 10 }
 0x139   : > { %v753_v31 = vsel %vm713_vm11, %v744_v7, %v703_v29  ;;  %vm813_vm11 = vcmp.eq.s32.totalorder %v1664_v10, 11 }
 0x13b   : > { %1031 = vperm.xlu1 %1309, %v1500_v6   ;;  %v790_v6 = vpop.permute.xlu0 %789 }
 0x13c   : > { %v720_v27 = vpop.permute.xlu1 %719 }
 0x13d   : > { %v747_v23 = vsel %vm707_vm12, %v720_v27, %v697_v60  ;;  %vm807_vm12 = vcmp.eq.s32.totalorder %v1595_v30, 11 }
 0x13e   : > { %v797_v32 = vsel %vm757_vm13, %v770_v4, %v747_v23  ;;  %vm857_vm13 = vcmp.eq.s32.totalorder %v1595_v30, 12 }
 0x13f   : > { %1039 = vperm.xlu1 %1309, %v1506_v8   ;;  %v816_v8 = vpop.permute.xlu0 %815 }
 0x140   : > { %v724_v35 = vpop.permute.xlu1 %723 }
 0x141   : > { %v748_v1 = vsel %vm708_vm14, %v724_v35, %v698_v21  ;;  %vm808_vm14 = vcmp.eq.s32.totalorder %v1733_v62, 11 }
 0x143   : > { %v828_v49 = vpop.permute.xlu0 %827 }
 0x144   : > { %v732_v37 = vpop.permute.xlu1 %731 }
 0x145   : > { %v750_v36 = vsel %vm710_vm15, %v732_v37, %v700_v13  ;;  %vm810_vm15 = vcmp.eq.s32.totalorder %v1603_v33, 11 }
 0x146   : > { %v800_v39 = vsel %vm760_vm0, %v782_v34, %v750_v36  ;;  %vm860_vm0 = vcmp.eq.s32.totalorder %v1603_v33, 12 }
 0x147   : > { %v836_v53 = vpop.permute.xlu0 %835 }
 0x148   : > { %v740_v40 = vpop.permute.xlu1 %739 }
 0x149   : > { %v752_v41 = vsel %vm712_vm1, %v740_v40, %v702_v17  ;;  %vm812_vm1 = vcmp.eq.s32.totalorder %v1614_v38, 11 }
 0x14a   : > { %v802_v43 = vsel %vm762_vm2, %v790_v6, %v752_v41  ;;  %vm862_vm2 = vcmp.eq.s32.totalorder %v1614_v38, 12 }
 0x14b   : > { %v844_v61 = vpop.permute.xlu0 %843 }
 0x14d   : > { %v766_v44 = vpop.permute.xlu1 %765 }
 0x14e   : > { %v796_v45 = vsel %vm756_vm3, %v766_v44, %v746_v19  ;;  %vm856_vm3 = vcmp.eq.s32.totalorder %v1618_v42, 12 }
 0x14f   : > { %v846_v48 = vsel %vm806_vm4, %v816_v8, %v796_v45  ;;  %v870_v9 = vpop.permute.xlu0 %869  ;;  %vm906_vm4 = vcmp.eq.s32.totalorder %v1618_v42, 13 }
 0x151   : > { %v774_v50 = vpop.permute.xlu1 %773 }
 0x152   : > { %v798_v51 = vsel %vm758_vm5, %v774_v50, %v748_v1  ;;  %vm858_vm5 = vcmp.eq.s32.totalorder %v1733_v62, 12 }
 0x153   : > { %v882_v15 = vpop.permute.xlu0 %881 }
 0x155   : > { %v778_v52 = vpop.permute.xlu1 %777 }
 0x156   : > { %v799_v55 = vsel %vm759_vm6, %v778_v52, %v749_v46  ;;  %vm859_vm6 = vcmp.eq.s32.totalorder %v1639_v54, 12 }
 0x157   : > { %v849_v47 = vsel %vm809_vm7, %v828_v49, %v799_v55  ;;  %v890_v19 = vpop.permute.xlu0 %889  ;;  %vm909_vm7 = vcmp.eq.s32.totalorder %v1639_v54, 13 }
 0x159   : > { %v786_v57 = vpop.permute.xlu1 %785 }
 0x15a   : > { %v801_v58 = vsel %vm761_vm8, %v786_v57, %v751_v25  ;;  %vm861_vm8 = vcmp.eq.s32.totalorder %v1651_v59, 12 }
 0x15b   : > { %v851_v60 = vsel %vm811_vm9, %v836_v53, %v801_v58  ;;  %v916_v3 = vpop.permute.xlu0 %915  ;;  %vm911_vm9 = vcmp.eq.s32.totalorder %v1651_v59, 13 }
 0x15d   : > { %v794_v56 = vpop.permute.xlu1 %793 }
 0x15e   : > { %v803_v63 = vsel %vm763_vm10, %v794_v56, %v753_v31  ;;  %vm863_vm10 = vcmp.eq.s32.totalorder %v1664_v10, 12 }
 0x15f   : > { %v853_v0 = vsel %vm813_vm11, %v844_v61, %v803_v63  ;;  %v928_v24 = vpop.permute.xlu0 %927  ;;  %vm913_vm11 = vcmp.eq.s32.totalorder %v1664_v10, 13 }
 0x162   : > { %v820_v12 = vpop.permute.xlu1 %819 }
 0x163   : > { %v847_v13 = vsel %vm807_vm12, %v820_v12, %v797_v32  ;;  %v936_v29 = vpop.permute.xlu0 %935  ;;  %vm907_vm12 = vcmp.eq.s32.totalorder %v1595_v30, 13 }
 0x164   : > { %v897_v14 = vsel %vm857_vm13, %v870_v9, %v847_v13  ;;  %vm957_vm13 = vcmp.eq.s32.totalorder %v1595_v30, 14 }
 0x166   : > { %v824_v17 = vpop.permute.xlu1 %823 }
 0x167   : > { %v848_v11 = vsel %vm808_vm14, %v824_v17, %v798_v51  ;;  %v944_v34 = vpop.permute.xlu0 %943  ;;  %vm908_vm14 = vcmp.eq.s32.totalorder %v1733_v62, 13 }
 0x16a   : > { %v832_v2 = vpop.permute.xlu1 %831 }
 0x16b   : > { %v850_v18 = vsel %vm810_vm15, %v832_v2, %v800_v39  ;;  %v970_v36 = vpop.permute.xlu0 %969  ;;  %vm910_vm15 = vcmp.eq.s32.totalorder %v1603_v33, 13 }
 0x16c   : > { %v900_v16 = vsel %vm860_vm0, %v882_v15, %v850_v18  ;;  %vm960_vm0 = vcmp.eq.s32.totalorder %v1603_v33, 14 }
 0x16e   : > { %v840_v20 = vpop.permute.xlu1 %839 }
 0x16f   : > { %v852_v21 = vsel %vm812_vm1, %v840_v20, %v802_v43  ;;  %v982_v43 = vpop.permute.xlu0 %981  ;;  %vm912_vm1 = vcmp.eq.s32.totalorder %v1614_v38, 13 }
 0x170   : > { %v902_v28 = vsel %vm862_vm2, %v890_v19, %v852_v21  ;;  %vm962_vm2 = vcmp.eq.s32.totalorder %v1614_v38, 14 }
 0x173   : > { %v866_v22 = vpop.permute.xlu1 %865  ;;  %v990_v49 = vpop.permute.xlu0 %989 }
 0x174   : > { %v896_v46 = vsel %vm856_vm3, %v866_v22, %v846_v48  ;;  %vm956_vm3 = vcmp.eq.s32.totalorder %v1618_v42, 14 }
 0x175   : > { %v946_v5 = vsel %vm906_vm4, %v916_v3, %v896_v46  ;;  %vm1006_vm4 = vcmp.eq.s32.totalorder %v1618_v42, 15 }
 0x177   : > { %v874_v25 = vpop.permute.xlu1 %873  ;;  %v1016_v53 = vpop.permute.xlu0 %1015 }
 0x178   : > { %v898_v7 = vsel %vm858_vm5, %v874_v25, %v848_v11  ;;  %vm958_vm5 = vcmp.eq.s32.totalorder %v1733_v62, 14 }
 0x17b   : > { %v878_v26 = vpop.permute.xlu1 %877  ;;  %v1028_v58 = vpop.permute.xlu0 %1027 }
 0x17c   : > { %v899_v31 = vsel %vm859_vm6, %v878_v26, %v849_v47  ;;  %vm959_vm6 = vcmp.eq.s32.totalorder %v1639_v54, 14 }
 0x17d   : > { %v949_v4 = vsel %vm909_vm7, %v928_v24, %v899_v31  ;;  %vm1009_vm7 = vcmp.eq.s32.totalorder %v1639_v54, 15 }
 0x17f   : > { %v886_v27 = vpop.permute.xlu1 %885  ;;  %v1036_v63 = vpop.permute.xlu0 %1035 }
 0x180   : > { %v901_v23 = vsel %vm861_vm8, %v886_v27, %v851_v60  ;;  %vm961_vm8 = vcmp.eq.s32.totalorder %v1651_v59, 14 }
 0x181   : > { %v951_v32 = vsel %vm911_vm9, %v936_v29, %v901_v23  ;;  %vm1011_vm9 = vcmp.eq.s32.totalorder %v1651_v59, 15 }
 0x183   : > { %v894_v35 = vpop.permute.xlu1 %893  ;;  %v1044_v54 = vpop.permute.xlu0 %1043 }
 0x184   : > { %v903_v1 = vsel %vm863_vm10, %v894_v35, %v853_v0  ;;  %vm963_vm10 = vcmp.eq.s32.totalorder %v1664_v10, 14 }
 0x185   : > { %v953_v37 = vsel %vm913_vm11, %v944_v34, %v903_v1  ;;  %vm1013_vm11 = vcmp.eq.s32.totalorder %v1664_v10, 15 }
 0x188   : > { %v920_v6 = vpop.permute.xlu1 %919 }
 0x189   : > { %v947_v39 = vsel %vm907_vm12, %v920_v6, %v897_v14  ;;  %vm1007_vm12 = vcmp.eq.s32.totalorder %v1595_v30, 15 }
 0x18a   : > { %v997_v40 = vsel %vm957_vm13, %v970_v36, %v947_v39  ;;  %vm1008_vm13 = vcmp.eq.s32.totalorder %v1733_v62, 15 }
 0x18c   : > { %v924_v41 = vpop.permute.xlu1 %923 }
 0x18d   : > { %v948_v8 = vsel %vm908_vm14, %v924_v41, %v898_v7  ;;  %vm1010_vm14 = vcmp.eq.s32.totalorder %v1603_v33, 15 }
 0x190   : > { %v932_v44 = vpop.permute.xlu1 %931 }
 0x191   : > { %v950_v45 = vsel %vm910_vm15, %v932_v44, %v900_v16  ;;  %vm1012_vm15 = vcmp.eq.s32.totalorder %v1614_v38, 15 }
 0x192   : > { %v1000_v48 = vsel %vm960_vm0, %v982_v43, %v950_v45 }
 0x194   : > { %v940_v50 = vpop.permute.xlu1 %939 }
 0x195   : > { %v952_v51 = vsel %vm912_vm1, %v940_v50, %v902_v28 }
 0x196   : > { %v1002_v52 = vsel %vm962_vm2, %v990_v49, %v952_v51 }
 0x199   : > { %v966_v55 = vpop.permute.xlu1 %965 }
 0x19a   : > { %v996_v47 = vsel %vm956_vm3, %v966_v55, %v946_v5 }
 0x19b   : > { %v1046_v57 = vsel %vm1006_vm4, %v1016_v53, %v996_v47 }
 0x19c   : > { %1073 = vst [vmem:[%s1871_s5] sm:$0xff] %v1046_v57 }
 0x19d   : > { %v974_v60 = vpop.permute.xlu1 %973 }
 0x19e   : > { %v998_v61 = vsel %vm958_vm5, %v974_v60, %v948_v8 }
 0x1a1   : > { %v978_v42 = vpop.permute.xlu1 %977 }
 0x1a2   : > { %v999_v56 = vsel %vm959_vm6, %v978_v42, %v949_v4 }
 0x1a3   : > { %v1049_v0 = vsel %vm1009_vm7, %v1028_v58, %v999_v56 }
 0x1a4   : > { %1076 = vst [vmem:[%s1871_s5 + $0x18] sm:$0xff] %v1049_v0 }
 0x1a5   : > { %v986_v9 = vpop.permute.xlu1 %985 }
 0x1a6   : > { %v1001_v12 = vsel %vm961_vm8, %v986_v9, %v951_v32 }
 0x1a7   : > { %v1051_v13 = vsel %vm1011_vm9, %v1036_v63, %v1001_v12 }
 0x1a8   : > { %1078 = vst [vmem:[%s1871_s5 + $0x28] sm:$0xff] %v1051_v13 }
 0x1a9   : > { %v994_v14 = vpop.permute.xlu1 %993 }
 0x1aa   : > { %v1003_v15 = vsel %vm963_vm10, %v994_v14, %v953_v37 }
 0x1ab   : > { %v1053_v17 = vsel %vm1013_vm11, %v1044_v54, %v1003_v15 }
 0x1ac   : > { %1080 = vst [vmem:[%s1871_s5 + $0x38] sm:$0xff] %v1053_v17 }
 0x1ae   : > { %v1020_v59 = vpop.permute.xlu1 %1019 }
 0x1af   : > { %v1047_v11 = vsel %vm1007_vm12, %v1020_v59, %v997_v40 }
 0x1b0   : > { %1074 = vst [vmem:[%s1871_s5 + $0x8] sm:$0xff] %v1047_v11 }
 0x1b2   : > { %v1024_v2 = vpop.permute.xlu1 %1023 }
 0x1b3   : > { %v1048_v18 = vsel %vm1008_vm13, %v1024_v2, %v998_v61 }
 0x1b4   : > { %1075 = vst [vmem:[%s1871_s5 + $0x10] sm:$0xff] %v1048_v18 }
 0x1b6   : > { %v1032_v10 = vpop.permute.xlu1 %1031 }
 0x1b7   : > { %v1050_v19 = vsel %vm1010_vm14, %v1032_v10, %v1000_v48 }
 0x1b8   : > { %1077 = vst [vmem:[%s1871_s5 + $0x20] sm:$0xff] %v1050_v19 }
 0x1ba   : > { %v1040_v30 = vpop.permute.xlu1 %1039 }
 0x1bb   : > { %v1052_v62 = vsel %vm1012_vm15, %v1040_v30, %v1002_v52 }
 0x1bc   : > { %1079 = vst [vmem:[%s1871_s5 + $0x30] sm:$0xff] %v1052_v62 }
 0x1bd   : > { %1323 = shalt.err (!%p1320_p5)
}
 0x1be   : > { %s1324_s25 = scalar_lea.hbm %s1895_s16, 1024  ;;  %s1328_s28 = scalar_lea.hbm %s1949_s2, 2048 }
 0x1bf   : > { %p1325_p6 = scmp.ne.s32.totalorder %s1895_s16, %s1324_s25  ;;  %p1329_p10 = scmp.lt.s32.totalorder %s1895_s16, %s1949_s2 }
 0x1c0   : > { %p1330_p11 = scmp.lt.s32.totalorder %s1328_s28, %s1324_s25 }
 0x1c1   : > { %p1326_p7 = pnand %p1325_p6, %p1462_p4 }
 0x1c2   : > { %p1331_p12 = por %p1330_p11, %p1329_p10 }
 0x1c3   : > { %p1327_p9 = pneg %p1326_p7 }
 0x1c5   : > { %p1332_p13 = pnand %p1331_p12, %p1327_p9 }
 0x1c7   : > { %1335 = shalt.err (!%p1332_p13)
}
 0x1c8   : > { %s1405_s3 = smov 128   ;;  %s1406_s4 = smov 8  }
 0x1c9   : > { %1205 = dma.vmem_to_hbm [thread:$0]  (%p1462_p4), %s1897_s7, 1024, %s1895_s16, %s1902_s12, %s1405_s3, %s1405_s3, %s1406_s4  }
 0x1ca PF: > { %p1211_p0 = scmp.ge.s32.totalorder %s1386_s14, 2  ;;  %s1111_s5 = sand.u32 1, %s1366_s9  }
 0x1cb   : > { %s1112_s6 = scalar_lea.sflag [#allocation4], %s1111_s5 }
 0x1cc   : > { %p1208_p1 = pnand %p1211_p0, %p1469_p8 }
 0x1ce   : > { %p1209_p2 = pneg %p1208_p1 }
 0x1d0   : > { %1361 = dma.done.wait (%p1209_p2), %s1112_s6, 1024  }
 0x1d1   : > { %1363 = vsyncadd (%p1209_p2), %s1112_s6, 4294966272  ;;  %s15_s14 = sadd.s32 1, %s1386_s14   ;;  %s1952_s9 = smov %s1370_s10 }
 0x1d2   : > { %p12_p3 = scmp.ge.s32.totalorder %s15_s14, 4   ;;  %s1953_s10 = smov %s1374_s11 }
 0x1d3   : > { %s1954_s11 = smov %s1475_s22  ;;  %s1955_s12 = smov %s1382_s13 }
 0x1d4   : > { %s1956_s13 = smov %s1958_s17  ;;  %14 = sbr.rel (!%p12_p3) target bundleno = 4 (0x4), region = 74 }
 0x1d9   :  { %1117 = vsyncpa [#allocation4], 1 }
 0x1da   :  { %1119 = vsyncpa [#allocation4 + $0x1], 1 }

</bundles_post_ra>
